<compile_context>
chip_gen: v5e
topology: v5e:2x2
jax: 0.10.0
libtpu: 0.0.40
codegen_flags: <defaults>
</compile_context>

<pallas_src>
import functools
import math

import jax
import jax.numpy as jnp
from jax.experimental import pallas as pl
from jax.experimental.pallas import tpu as pltpu

# ----- small synthetic hyperparameters (d_model=512/d_ff=2048 scaled down) -----
D_MODEL = 128          # = one full vreg lane width -> lane-dense output store
D_K = 16
D_V = 16
H = 4
D_FF = 256
SEQ = 8
BATCH = 2
LN_EPS = 1e-5          # torch.nn.LayerNorm default

HDK = H * D_K
HDV = H * D_V
QKV_W = 2 * HDK + HDV  # packed QKV projection width


def _layer_norm(x, gamma, beta):
    mean = jnp.mean(x, axis=-1, keepdims=True)
    var = jnp.mean((x - mean) ** 2, axis=-1, keepdims=True)
    return (x - mean) * jax.lax.rsqrt(var + LN_EPS) * gamma + beta


def encoder_layer_kernel(x_ref, amask_ref, pmask_ref, wqkv_ref, wo_ref,
                         w1_ref, w2_ref, vec_ref, out_ref,
                         *, b, n, d, d_k, d_v, h, d_ff):
    """Single-invocation kernel: the whole (B*N, D) problem lives in VMEM."""
    hdk, hdv = h * d_k, h * d_v
    qkv_w = 2 * hdk + hdv

    x = x_ref[...]                                # (B*N, D) f32 (residual path)
    x_bf = x.astype(jnp.bfloat16)

    # packed bias / LayerNorm vectors: one (8, d_ff) tile, sliced statically
    vecs = vec_ref[...]
    bqkv = vecs[0:1, :qkv_w]
    bo = vecs[1:2, :d]
    g1, be1 = vecs[2:3, :d], vecs[3:4, :d]
    b1 = vecs[4:5, :d_ff]
    b2 = vecs[5:6, :d]
    g2, be2 = vecs[6:7, :d], vecs[7:8, :d]

    # ---- fused Q/K/V projection: ONE (B*N, D) @ (D, 2*HDK+HDV) MXU push ----
    # (1/sqrt(d_k) already folded into the Q columns of wqkv / bqkv at pack time)
    qkv = jnp.dot(x_bf, wqkv_ref[...],
                  preferred_element_type=jnp.float32) + bqkv       # (B*N, QKV_W) f32

    # ---- head-major (H*B, N, *) views: leading-axis stacking, no lane concat ----
    def heads_leading(lo, width):
        parts = [qkv[:, lo + i * width: lo + (i + 1) * width].reshape(b, n, width)
                 for i in range(h)]
        return jnp.concatenate(parts, axis=0).astype(jnp.bfloat16)  # (H*B, N, width)

    q_hb = heads_leading(0, d_k)
    k_hb = heads_leading(hdk, d_k)
    v_hb = heads_leading(2 * hdk, d_v)

    # additive attention-mask term, computed once and broadcast over heads (f32)
    madd = jnp.where(amask_ref[...] > 0, jnp.float32(-1e30), jnp.float32(0.0))  # (B, N)
    madd = jnp.broadcast_to(madd[None, :, None, :], (h, b, 1, n)).reshape(h * b, 1, n)

    # ---- attention: ONE scores einsum + ONE context einsum, batch = H*B ----
    s = jnp.einsum('bqd,bkd->bqk', q_hb, k_hb,
                   preferred_element_type=jnp.float32) + madd       # (H*B, N, N) f32
    m = jnp.max(s, axis=-1, keepdims=True)
    p = jnp.exp(s - m)
    inv = pl.reciprocal(jnp.sum(p, axis=-1, keepdims=True), approx=True)
    att = (p * inv).astype(jnp.bfloat16)
    ctx = jnp.einsum('bqk,bkd->bqd', att, v_hb,
                     preferred_element_type=jnp.float32)            # (H*B, N, d_v) f32

    # ---- output projection: head-batched einsum, per-head partials summed ----
    # (replaces the lane-axis concat + single (B*N, H*d_v) matmul: same MAC count,
    #  no XLU concat, no unsupported (b,n,h,d)->(b,h,n,d) relayout)
    ctx_h = ctx.reshape(h, b, n, d_v).reshape(h, b * n, d_v).astype(jnp.bfloat16)
    mho = jnp.einsum('hrv,hvo->hro', ctx_h, wo_ref[...],
                     preferred_element_type=jnp.float32)            # (H, B*N, D) f32
    mh = bo
    for hi in range(h):
        mh = mh + mho[hi]

    # dropout == identity (eval); residual + layer norm (f32)
    ln1 = _layer_norm(x + mh, g1, be1)

    # ---- position-wise feed forward (bf16 MXU operands, f32 accumulate) ----
    hid = jnp.maximum(
        jnp.dot(ln1.astype(jnp.bfloat16), w1_ref[...],
                preferred_element_type=jnp.float32) + b1, 0.0)
    ffo = jnp.dot(hid.astype(jnp.bfloat16), w2_ref[...],
                  preferred_element_type=jnp.float32) + b2
    ln2 = _layer_norm(ln1 + ffo, g2, be2)

    # ---- padding mask (masked_fill(padding_mask, 0)); lane-dense (D=128) store ----
    out_ref[...] = jnp.where(pmask_ref[...] > 0, 0.0, ln2).astype(out_ref.dtype)


def pack_params(params):
    """One-time parameter packing: fused QKV slab (scale folded in), head-major Wo,
    bf16 weight casts, and all (1, K) bias / LayerNorm vectors in one (8, D_FF) slab."""
    (wq, bq, wk, bk, wv, bv, wo, bo, g1, be1, w1, b1, w2, b2, g2, be2) = params
    scale = 1.0 / math.sqrt(D_K)
    wqkv = jnp.concatenate([wq * scale, wk, wv], axis=1).astype(jnp.bfloat16)  # (D, QKV_W)
    bqkv = jnp.concatenate([bq * scale, bk, bv], axis=1)                       # (1, QKV_W)
    wo3 = wo.reshape(H, D_V, D_MODEL).astype(jnp.bfloat16)                     # (H, d_v, D)
    w1b = w1.astype(jnp.bfloat16)
    w2b = w2.astype(jnp.bfloat16)

    def row(v):  # pad each (1, K) vector to width D_FF so they stack into one tile
        return jnp.pad(v, ((0, 0), (0, D_FF - v.shape[1])))

    vecs = jnp.concatenate(
        [row(bqkv), row(bo), row(g1), row(be1),
         row(b1), row(b2), row(g2), row(be2)], axis=0)                         # (8, D_FF)
    return wqkv, wo3, w1b, w2b, vecs


def encoder_layer(x, attention_mask, padding_mask, packed_params):
    """Self-attention EncoderLayer forward (queries = keys = values = x), eval mode.
    # TODO(synk): cross-attention (distinct keys/values) would need them passed as
    # extra activation inputs; the encoder path of the reference model is self-attn.
    """
    B, N, D = x.shape
    wqkv, wo3, w1b, w2b, vecs = packed_params

    x2 = x.reshape(B * N, D)
    amask = attention_mask.reshape(B, N).astype(jnp.float32)
    pmask = padding_mask.reshape(B * N, 1).astype(jnp.float32)

    kern = functools.partial(encoder_layer_kernel, b=B, n=N, d=D,
                             d_k=D_K, d_v=D_V, h=H, d_ff=D_FF)
    vmem = pl.BlockSpec(memory_space=pltpu.MemorySpace.VMEM)
    out = pl.pallas_call(
        kern,
        out_shape=jax.ShapeDtypeStruct((B * N, D), jnp.float32),
        in_specs=[vmem] * 8,
        out_specs=vmem,
    )(x2, amask, pmask, wqkv, wo3, w1b, w2b, vecs)
    return out.reshape(B, N, D)


def init_params(key):
    ks = jax.random.split(key, 6)
    s = 0.05
    wq = s * jax.random.normal(ks[0], (D_MODEL, HDK), jnp.float32)
    wk = s * jax.random.normal(ks[1], (D_MODEL, HDK), jnp.float32)
    wv = s * jax.random.normal(ks[2], (D_MODEL, HDV), jnp.float32)
    wo = s * jax.random.normal(ks[3], (HDV, D_MODEL), jnp.float32)
    w1 = s * jax.random.normal(ks[4], (D_MODEL, D_FF), jnp.float32)
    w2 = s * jax.random.normal(ks[5], (D_FF, D_MODEL), jnp.float32)
    z = lambda n: jnp.zeros((1, n), jnp.float32)
    o = lambda n: jnp.ones((1, n), jnp.float32)
    return [
        wq, z(HDK), wk, z(HDK), wv, z(HDV), wo, z(D_MODEL),
        o(D_MODEL), z(D_MODEL),               # mha layer_norm
        w1, z(D_FF), w2, z(D_MODEL),
        o(D_MODEL), z(D_MODEL),               # pwff layer_norm
    ]


def reference(q, k, v, amask, pmask, params):
    (wq, bq, wk, bk, wv, bv, wo, bo, g1, be1, w1, b1, w2, b2, g2, be2) = params
    B, N, D = q.shape

    def ln(x, g, b_):
        m = jnp.mean(x, -1, keepdims=True)
        va = jnp.mean((x - m) ** 2, -1, keepdims=True)
        return (x - m) * jax.lax.rsqrt(va + LN_EPS) * g + b_

    qp = (q @ wq + bq).reshape(B, N, H, D_K).transpose(0, 2, 1, 3)
    kp = (k @ wk + bk).reshape(B, N, H, D_K).transpose(0, 2, 1, 3)
    vp = (v @ wv + bv).reshape(B, N, H, D_V).transpose(0, 2, 1, 3)
    sc = jnp.einsum('bhqd,bhkd->bhqk', qp, kp) / math.sqrt(D_K)
    sc = jnp.where(amask[:, None, :, :] > 0, -1e30, sc)
    att = jax.nn.softmax(sc, axis=-1)
    o = jnp.einsum('bhqk,bhkd->bhqd', att, vp).transpose(0, 2, 1, 3).reshape(B, N, H * D_V)
    mh = o @ wo + bo
    ln1 = ln(q + mh, g1, be1)
    ff = jnp.maximum(ln1 @ w1 + b1, 0.0) @ w2 + b2
    ln2 = ln(ln1 + ff, g2, be2)
    return jnp.where(pmask > 0, 0.0, ln2)


if __name__ == "__main__":
    key = jax.random.PRNGKey(0)
    kx, kp = jax.random.split(key)
    x = jax.random.normal(kx, (BATCH, SEQ, D_MODEL), jnp.float32)
    params = init_params(kp)
    packed = pack_params(params)

    # sequence lengths [8, 6]: batch 1 has its last 2 positions masked/padded
    lengths = jnp.array([SEQ, SEQ - 2])
    pos = jnp.arange(SEQ)
    masked = (pos[None, :] >= lengths[:, None]).astype(jnp.float32)   # (B, N)
    attention_mask = masked[:, None, :]                               # (B, 1, N)
    padding_mask = masked[:, :, None]                                 # (B, N, 1)

    out = encoder_layer(x, attention_mask, padding_mask, packed)
    out = jax.block_until_ready(out)

    ref = reference(x, x, x, attention_mask, padding_mask, params)
    # tolerance accounts for bf16 MXU operands + the approximate (EUP) softmax
    # reciprocal; reference is pure f32.
    assert jnp.allclose(out, ref, rtol=3e-2, atol=3e-2), "mismatch vs JAX reference"

    print("KERNEL_OK")
</pallas_src>

<mosaic_0001>
module attributes {stable_mosaic.version = 11 : i64} {
  func.func @encoder_layer_kernel(%arg0: memref<16x128xf32, #tpu.memory_space<vmem>>, %arg1: memref<2x8xf32, #tpu.memory_space<vmem>>, %arg2: memref<16x1xf32, #tpu.memory_space<vmem>>, %arg3: memref<128x192xbf16, #tpu.memory_space<vmem>>, %arg4: memref<4x16x128xbf16, #tpu.memory_space<vmem>>, %arg5: memref<128x256xbf16, #tpu.memory_space<vmem>>, %arg6: memref<256x128xbf16, #tpu.memory_space<vmem>>, %arg7: memref<8x256xf32, #tpu.memory_space<vmem>>, %arg8: memref<16x128xf32, #tpu.memory_space<vmem>>) attributes {dimension_semantics = [], scalar_prefetch = 0 : i64, scratch_operands = 0 : i64, tpu.core_type = #tpu.core_type<tc>} {
    %c0 = arith.constant 0 : index
    %c0_0 = arith.constant 0 : index
    %0 = vector.load %arg0[%c0, %c0_0] : memref<16x128xf32, #tpu.memory_space<vmem>>, vector<16x128xf32>
    %1 = arith.truncf %0 : vector<16x128xf32> to vector<16x128xbf16>
    %c0_1 = arith.constant 0 : index
    %c0_2 = arith.constant 0 : index
    %2 = vector.load %arg7[%c0_1, %c0_2] : memref<8x256xf32, #tpu.memory_space<vmem>>, vector<8x256xf32>
    %3 = vector.extract_strided_slice %2 {offsets = [0, 0], sizes = [1, 192], strides = [1, 1]} : vector<8x256xf32> to vector<1x192xf32>
    %4 = vector.extract_strided_slice %2 {offsets = [1, 0], sizes = [1, 128], strides = [1, 1]} : vector<8x256xf32> to vector<1x128xf32>
    %5 = vector.extract_strided_slice %2 {offsets = [2, 0], sizes = [1, 128], strides = [1, 1]} : vector<8x256xf32> to vector<1x128xf32>
    %6 = vector.extract_strided_slice %2 {offsets = [3, 0], sizes = [1, 128], strides = [1, 1]} : vector<8x256xf32> to vector<1x128xf32>
    %7 = vector.extract_strided_slice %2 {offsets = [4, 0], sizes = [1, 256], strides = [1, 1]} : vector<8x256xf32> to vector<1x256xf32>
    %8 = vector.extract_strided_slice %2 {offsets = [5, 0], sizes = [1, 128], strides = [1, 1]} : vector<8x256xf32> to vector<1x128xf32>
    %9 = vector.extract_strided_slice %2 {offsets = [6, 0], sizes = [1, 128], strides = [1, 1]} : vector<8x256xf32> to vector<1x128xf32>
    %10 = vector.extract_strided_slice %2 {offsets = [7, 0], sizes = [1, 128], strides = [1, 1]} : vector<8x256xf32> to vector<1x128xf32>
    %c0_3 = arith.constant 0 : index
    %c0_4 = arith.constant 0 : index
    %11 = vector.load %arg3[%c0_3, %c0_4] : memref<128x192xbf16, #tpu.memory_space<vmem>>, vector<128x192xbf16>
    %cst = arith.constant dense<0.000000e+00> : vector<16x192xf32>
    %12 = tpu.matmul %1, %11, %cst {dimension_numbers = #tpu.dot_dimension_numbers<[1], [0], [0], [1], [0, 0, 1, 1], [], []>} : vector<16x128xbf16>, vector<128x192xbf16>, vector<16x192xf32> -> vector<16x192xf32>
    %13 = vector.broadcast %3 : vector<1x192xf32> to vector<16x192xf32>
    %14 = arith.addf %12, %13 : vector<16x192xf32>
    %15 = vector.extract_strided_slice %14 {offsets = [0, 0], sizes = [16, 16], strides = [1, 1]} : vector<16x192xf32> to vector<16x16xf32>
    %16 = vector.shape_cast %15 : vector<16x16xf32> to vector<2x8x16xf32>
    %17 = vector.extract_strided_slice %14 {offsets = [0, 16], sizes = [16, 16], strides = [1, 1]} : vector<16x192xf32> to vector<16x16xf32>
    %18 = vector.shape_cast %17 : vector<16x16xf32> to vector<2x8x16xf32>
    %19 = vector.extract_strided_slice %14 {offsets = [0, 32], sizes = [16, 16], strides = [1, 1]} : vector<16x192xf32> to vector<16x16xf32>
    %20 = vector.shape_cast %19 : vector<16x16xf32> to vector<2x8x16xf32>
    %21 = vector.extract_strided_slice %14 {offsets = [0, 48], sizes = [16, 16], strides = [1, 1]} : vector<16x192xf32> to vector<16x16xf32>
    %22 = vector.shape_cast %21 : vector<16x16xf32> to vector<2x8x16xf32>
    %23 = tpu.concatenate %16, %18, %20, %22 in 0 : vector<2x8x16xf32>, vector<2x8x16xf32>, vector<2x8x16xf32>, vector<2x8x16xf32> -> vector<8x8x16xf32>
    %24 = arith.truncf %23 : vector<8x8x16xf32> to vector<8x8x16xbf16>
    %25 = vector.extract_strided_slice %14 {offsets = [0, 64], sizes = [16, 16], strides = [1, 1]} : vector<16x192xf32> to vector<16x16xf32>
    %26 = vector.shape_cast %25 : vector<16x16xf32> to vector<2x8x16xf32>
    %27 = vector.extract_strided_slice %14 {offsets = [0, 80], sizes = [16, 16], strides = [1, 1]} : vector<16x192xf32> to vector<16x16xf32>
    %28 = vector.shape_cast %27 : vector<16x16xf32> to vector<2x8x16xf32>
    %29 = vector.extract_strided_slice %14 {offsets = [0, 96], sizes = [16, 16], strides = [1, 1]} : vector<16x192xf32> to vector<16x16xf32>
    %30 = vector.shape_cast %29 : vector<16x16xf32> to vector<2x8x16xf32>
    %31 = vector.extract_strided_slice %14 {offsets = [0, 112], sizes = [16, 16], strides = [1, 1]} : vector<16x192xf32> to vector<16x16xf32>
    %32 = vector.shape_cast %31 : vector<16x16xf32> to vector<2x8x16xf32>
    %33 = tpu.concatenate %26, %28, %30, %32 in 0 : vector<2x8x16xf32>, vector<2x8x16xf32>, vector<2x8x16xf32>, vector<2x8x16xf32> -> vector<8x8x16xf32>
    %34 = arith.truncf %33 : vector<8x8x16xf32> to vector<8x8x16xbf16>
    %35 = vector.extract_strided_slice %14 {offsets = [0, 128], sizes = [16, 16], strides = [1, 1]} : vector<16x192xf32> to vector<16x16xf32>
    %36 = vector.shape_cast %35 : vector<16x16xf32> to vector<2x8x16xf32>
    %37 = vector.extract_strided_slice %14 {offsets = [0, 144], sizes = [16, 16], strides = [1, 1]} : vector<16x192xf32> to vector<16x16xf32>
    %38 = vector.shape_cast %37 : vector<16x16xf32> to vector<2x8x16xf32>
    %39 = vector.extract_strided_slice %14 {offsets = [0, 160], sizes = [16, 16], strides = [1, 1]} : vector<16x192xf32> to vector<16x16xf32>
    %40 = vector.shape_cast %39 : vector<16x16xf32> to vector<2x8x16xf32>
    %41 = vector.extract_strided_slice %14 {offsets = [0, 176], sizes = [16, 16], strides = [1, 1]} : vector<16x192xf32> to vector<16x16xf32>
    %42 = vector.shape_cast %41 : vector<16x16xf32> to vector<2x8x16xf32>
    %43 = tpu.concatenate %36, %38, %40, %42 in 0 : vector<2x8x16xf32>, vector<2x8x16xf32>, vector<2x8x16xf32>, vector<2x8x16xf32> -> vector<8x8x16xf32>
    %44 = arith.truncf %43 : vector<8x8x16xf32> to vector<8x8x16xbf16>
    %c0_5 = arith.constant 0 : index
    %c0_6 = arith.constant 0 : index
    %45 = vector.load %arg1[%c0_5, %c0_6] : memref<2x8xf32, #tpu.memory_space<vmem>>, vector<2x8xf32>
    %cst_7 = arith.constant 0.000000e+00 : f32
    %46 = vector.broadcast %cst_7 : f32 to vector<2x8xf32>
    %47 = arith.cmpf ogt, %45, %46 : vector<2x8xf32>
    %cst_8 = arith.constant -1.000000e+30 : f32
    %cst_9 = arith.constant 0.000000e+00 : f32
    %48 = vector.broadcast %cst_8 : f32 to vector<2x8xf32>
    %49 = vector.broadcast %cst_9 : f32 to vector<2x8xf32>
    %50 = arith.select %47, %48, %49 : vector<2x8xi1>, vector<2x8xf32>
    %51 = vector.shape_cast %50 : vector<2x8xf32> to vector<1x2x1x8xf32>
    %52 = vector.shape_cast %51 : vector<1x2x1x8xf32> to vector<1x2x1x8xf32>
    %53 = vector.broadcast %52 : vector<1x2x1x8xf32> to vector<4x2x1x8xf32>
    %54 = vector.shape_cast %53 : vector<4x2x1x8xf32> to vector<8x1x8xf32>
    "tpu.trace_start"() <{level = 10 : i32, message = "bqd,bkd->bqk"}> : () -> ()
    %cst_10 = arith.constant dense<0.000000e+00> : vector<8x8x8xf32>
    %55 = tpu.matmul %24, %34, %cst_10 {dimension_numbers = #tpu.dot_dimension_numbers<[2], [2], [1], [1], [0, 0, 0, 1, 1, 1], [0], [0]>} : vector<8x8x16xbf16>, vector<8x8x16xbf16>, vector<8x8x8xf32> -> vector<8x8x8xf32>
    "tpu.trace_stop"() : () -> ()
    %56 = vector.broadcast %54 : vector<8x1x8xf32> to vector<8x8x8xf32>
    %57 = arith.addf %55, %56 : vector<8x8x8xf32>
    %cst_11 = arith.constant dense<0xFF800000> : vector<8x8xf32>
    %58 = vector.multi_reduction <maximumf>, %57, %cst_11 [2] : vector<8x8x8xf32> to vector<8x8xf32>
    %59 = vector.shape_cast %58 : vector<8x8xf32> to vector<8x8x1xf32>
    %60 = vector.broadcast %59 : vector<8x8x1xf32> to vector<8x8x8xf32>
    %61 = arith.subf %57, %60 : vector<8x8x8xf32>
    %62 = math.exp %61 : vector<8x8x8xf32>
    %cst_12 = arith.constant dense<0.000000e+00> : vector<8x8xf32>
    %63 = vector.multi_reduction <add>, %62, %cst_12 [2] : vector<8x8x8xf32> to vector<8x8xf32>
    %64 = vector.shape_cast %63 : vector<8x8xf32> to vector<8x8x1xf32>
    %65 = tpu.reciprocal %64 {approx = true} : vector<8x8x1xf32> -> vector<8x8x1xf32>
    %66 = vector.broadcast %65 : vector<8x8x1xf32> to vector<8x8x8xf32>
    %67 = arith.mulf %62, %66 : vector<8x8x8xf32>
    %68 = arith.truncf %67 : vector<8x8x8xf32> to vector<8x8x8xbf16>
    "tpu.trace_start"() <{level = 10 : i32, message = "bqk,bkd->bqd"}> : () -> ()
    %cst_13 = arith.constant dense<0.000000e+00> : vector<8x8x16xf32>
    %69 = tpu.matmul %68, %44, %cst_13 {dimension_numbers = #tpu.dot_dimension_numbers<[2], [1], [1], [2], [0, 0, 0, 1, 1, 2], [0], [0]>} : vector<8x8x8xbf16>, vector<8x8x16xbf16>, vector<8x8x16xf32> -> vector<8x8x16xf32>
    "tpu.trace_stop"() : () -> ()
    %70 = vector.shape_cast %69 : vector<8x8x16xf32> to vector<4x2x8x16xf32>
    %71 = vector.shape_cast %70 : vector<4x2x8x16xf32> to vector<4x16x16xf32>
    %72 = arith.truncf %71 : vector<4x16x16xf32> to vector<4x16x16xbf16>
    %c0_14 = arith.constant 0 : index
    %c0_15 = arith.constant 0 : index
    %c0_16 = arith.constant 0 : index
    %73 = vector.load %arg4[%c0_14, %c0_15, %c0_16] : memref<4x16x128xbf16, #tpu.memory_space<vmem>>, vector<4x16x128xbf16>
    "tpu.trace_start"() <{level = 10 : i32, message = "hrv,hvo->hro"}> : () -> ()
    %cst_17 = arith.constant dense<0.000000e+00> : vector<4x16x128xf32>
    %74 = tpu.matmul %72, %73, %cst_17 {dimension_numbers = #tpu.dot_dimension_numbers<[2], [1], [1], [2], [0, 0, 0, 1, 1, 2], [0], [0]>} : vector<4x16x16xbf16>, vector<4x16x128xbf16>, vector<4x16x128xf32> -> vector<4x16x128xf32>
    "tpu.trace_stop"() : () -> ()
    %75 = vector.extract_strided_slice %74 {offsets = [0, 0, 0], sizes = [1, 16, 128], strides = [1, 1, 1]} : vector<4x16x128xf32> to vector<1x16x128xf32>
    %76 = vector.shape_cast %75 : vector<1x16x128xf32> to vector<16x128xf32>
    %77 = vector.broadcast %4 : vector<1x128xf32> to vector<16x128xf32>
    %78 = arith.addf %77, %76 : vector<16x128xf32>
    %79 = vector.extract_strided_slice %74 {offsets = [1, 0, 0], sizes = [1, 16, 128], strides = [1, 1, 1]} : vector<4x16x128xf32> to vector<1x16x128xf32>
    %80 = vector.shape_cast %79 : vector<1x16x128xf32> to vector<16x128xf32>
    %81 = arith.addf %78, %80 : vector<16x128xf32>
    %82 = vector.extract_strided_slice %74 {offsets = [2, 0, 0], sizes = [1, 16, 128], strides = [1, 1, 1]} : vector<4x16x128xf32> to vector<1x16x128xf32>
    %83 = vector.shape_cast %82 : vector<1x16x128xf32> to vector<16x128xf32>
    %84 = arith.addf %81, %83 : vector<16x128xf32>
    %85 = vector.extract_strided_slice %74 {offsets = [3, 0, 0], sizes = [1, 16, 128], strides = [1, 1, 1]} : vector<4x16x128xf32> to vector<1x16x128xf32>
    %86 = vector.shape_cast %85 : vector<1x16x128xf32> to vector<16x128xf32>
    %87 = arith.addf %84, %86 : vector<16x128xf32>
    %88 = arith.addf %0, %87 : vector<16x128xf32>
    %cst_18 = arith.constant dense<0.000000e+00> : vector<16xf32>
    %89 = vector.multi_reduction <add>, %88, %cst_18 [1] : vector<16x128xf32> to vector<16xf32>
    %90 = vector.shape_cast %89 : vector<16xf32> to vector<16x1xf32>
    %cst_19 = arith.constant 1.280000e+02 : f32
    %91 = vector.broadcast %cst_19 : f32 to vector<16x1xf32>
    %92 = arith.divf %90, %91 : vector<16x1xf32>
    %93 = vector.broadcast %92 : vector<16x1xf32> to vector<16x128xf32>
    %94 = arith.subf %88, %93 : vector<16x128xf32>
    %95 = arith.mulf %94, %94 : vector<16x128xf32>
    %cst_20 = arith.constant dense<0.000000e+00> : vector<16xf32>
    %96 = vector.multi_reduction <add>, %95, %cst_20 [1] : vector<16x128xf32> to vector<16xf32>
    %97 = vector.shape_cast %96 : vector<16xf32> to vector<16x1xf32>
    %cst_21 = arith.constant 1.280000e+02 : f32
    %98 = vector.broadcast %cst_21 : f32 to vector<16x1xf32>
    %99 = arith.divf %97, %98 : vector<16x1xf32>
    %100 = vector.broadcast %92 : vector<16x1xf32> to vector<16x128xf32>
    %101 = arith.subf %88, %100 : vector<16x128xf32>
    %cst_22 = arith.constant 9.99999974E-6 : f32
    %102 = vector.broadcast %cst_22 : f32 to vector<16x1xf32>
    %103 = arith.addf %99, %102 : vector<16x1xf32>
    %104 = math.rsqrt %103 : vector<16x1xf32>
    %105 = vector.broadcast %104 : vector<16x1xf32> to vector<16x128xf32>
    %106 = arith.mulf %101, %105 : vector<16x128xf32>
    %107 = vector.broadcast %5 : vector<1x128xf32> to vector<16x128xf32>
    %108 = arith.mulf %106, %107 : vector<16x128xf32>
    %109 = vector.broadcast %6 : vector<1x128xf32> to vector<16x128xf32>
    %110 = arith.addf %108, %109 : vector<16x128xf32>
    %111 = arith.truncf %110 : vector<16x128xf32> to vector<16x128xbf16>
    %c0_23 = arith.constant 0 : index
    %c0_24 = arith.constant 0 : index
    %112 = vector.load %arg5[%c0_23, %c0_24] : memref<128x256xbf16, #tpu.memory_space<vmem>>, vector<128x256xbf16>
    %cst_25 = arith.constant dense<0.000000e+00> : vector<16x256xf32>
    %113 = tpu.matmul %111, %112, %cst_25 {dimension_numbers = #tpu.dot_dimension_numbers<[1], [0], [0], [1], [0, 0, 1, 1], [], []>} : vector<16x128xbf16>, vector<128x256xbf16>, vector<16x256xf32> -> vector<16x256xf32>
    %114 = vector.broadcast %7 : vector<1x256xf32> to vector<16x256xf32>
    %115 = arith.addf %113, %114 : vector<16x256xf32>
    %cst_26 = arith.constant 0.000000e+00 : f32
    %116 = vector.broadcast %cst_26 : f32 to vector<16x256xf32>
    %117 = arith.maximumf %115, %116 : vector<16x256xf32>
    %118 = arith.truncf %117 : vector<16x256xf32> to vector<16x256xbf16>
    %c0_27 = arith.constant 0 : index
    %c0_28 = arith.constant 0 : index
    %119 = vector.load %arg6[%c0_27, %c0_28] : memref<256x128xbf16, #tpu.memory_space<vmem>>, vector<256x128xbf16>
    %cst_29 = arith.constant dense<0.000000e+00> : vector<16x128xf32>
    %120 = tpu.matmul %118, %119, %cst_29 {dimension_numbers = #tpu.dot_dimension_numbers<[1], [0], [0], [1], [0, 0, 1, 1], [], []>} : vector<16x256xbf16>, vector<256x128xbf16>, vector<16x128xf32> -> vector<16x128xf32>
    %121 = vector.broadcast %8 : vector<1x128xf32> to vector<16x128xf32>
    %122 = arith.addf %120, %121 : vector<16x128xf32>
    %123 = arith.addf %110, %122 : vector<16x128xf32>
    %cst_30 = arith.constant dense<0.000000e+00> : vector<16xf32>
    %124 = vector.multi_reduction <add>, %123, %cst_30 [1] : vector<16x128xf32> to vector<16xf32>
    %125 = vector.shape_cast %124 : vector<16xf32> to vector<16x1xf32>
    %cst_31 = arith.constant 1.280000e+02 : f32
    %126 = vector.broadcast %cst_31 : f32 to vector<16x1xf32>
    %127 = arith.divf %125, %126 : vector<16x1xf32>
    %128 = vector.broadcast %127 : vector<16x1xf32> to vector<16x128xf32>
    %129 = arith.subf %123, %128 : vector<16x128xf32>
    %130 = arith.mulf %129, %129 : vector<16x128xf32>
    %cst_32 = arith.constant dense<0.000000e+00> : vector<16xf32>
    %131 = vector.multi_reduction <add>, %130, %cst_32 [1] : vector<16x128xf32> to vector<16xf32>
    %132 = vector.shape_cast %131 : vector<16xf32> to vector<16x1xf32>
    %cst_33 = arith.constant 1.280000e+02 : f32
    %133 = vector.broadcast %cst_33 : f32 to vector<16x1xf32>
    %134 = arith.divf %132, %133 : vector<16x1xf32>
    %135 = vector.broadcast %127 : vector<16x1xf32> to vector<16x128xf32>
    %136 = arith.subf %123, %135 : vector<16x128xf32>
    %cst_34 = arith.constant 9.99999974E-6 : f32
    %137 = vector.broadcast %cst_34 : f32 to vector<16x1xf32>
    %138 = arith.addf %134, %137 : vector<16x1xf32>
    %139 = math.rsqrt %138 : vector<16x1xf32>
    %140 = vector.broadcast %139 : vector<16x1xf32> to vector<16x128xf32>
    %141 = arith.mulf %136, %140 : vector<16x128xf32>
    %142 = vector.broadcast %9 : vector<1x128xf32> to vector<16x128xf32>
    %143 = arith.mulf %141, %142 : vector<16x128xf32>
    %144 = vector.broadcast %10 : vector<1x128xf32> to vector<16x128xf32>
    %145 = arith.addf %143, %144 : vector<16x128xf32>
    %c0_35 = arith.constant 0 : index
    %c0_36 = arith.constant 0 : index
    %146 = vector.load %arg2[%c0_35, %c0_36] : memref<16x1xf32, #tpu.memory_space<vmem>>, vector<16x1xf32>
    %cst_37 = arith.constant 0.000000e+00 : f32
    %147 = vector.broadcast %cst_37 : f32 to vector<16x1xf32>
    %148 = arith.cmpf ogt, %146, %147 : vector<16x1xf32>
    %cst_38 = arith.constant 0.000000e+00 : f32
    %149 = vector.shape_cast %148 : vector<16x1xi1> to vector<16x1xi1>
    %150 = vector.broadcast %149 : vector<16x1xi1> to vector<16x128xi1>
    %151 = vector.broadcast %cst_38 : f32 to vector<16x128xf32>
    %152 = arith.select %150, %151, %145 : vector<16x128xi1>, vector<16x128xf32>
    %c0_39 = arith.constant 0 : index
    %c0_40 = arith.constant 0 : index
    %153 = vector.load %arg8[%c0_39, %c0_40] : memref<16x128xf32, #tpu.memory_space<vmem>>, vector<16x128xf32>
    tpu.vector_store %arg8[%c0_39, %c0_40], %152 {strides = array<i32>} : memref<16x128xf32, #tpu.memory_space<vmem>>, vector<16x128xf32>,
    return
  }
}

</mosaic_0001>

<bundles_post_ra>
// kernel: tpu_custom_call.1
= control target key start
LH: loop header
LB: loop body
LE: loop exit
PB: predicated region body
PF: predicated region fallthrough
CT: control target
= control target key end

     0   :  { %13 = vsyncpa [#allocation3], 0  ;;  %s2132_s0 = inlined_call_operand.vmem [shape: f32[16,128], index: 0, kind: input, shape index: {}]   ;;  %s2133_s1 = inlined_call_operand.vmem [shape: f32[2,8], index: 1, kind: input, shape index: {}]   ;;  %s2134_s2 = inlined_call_operand.vmem [shape: f32[16,1], index: 2, kind: input, shape index: {}]   ;;  %s2135_s3 = inlined_call_operand.vmem [shape: bf16[128,192], index: 3, kind: input, shape index: {}]   ;;  %s2136_s4 = inlined_call_operand.vmem [shape: bf16[4,16,128], index: 4, kind: input, shape index: {}]   ;;  %s2137_s5 = inlined_call_operand.vmem [shape: bf16[128,256], index: 5, kind: input, shape index: {}]   ;;  %s2138_s6 = inlined_call_operand.hbm [shape: bf16[256,128], index: 6, kind: input, shape index: {}]   ;;  %s2139_s7 = inlined_call_operand.vmem [shape: f32[8,256], index: 7, kind: input, shape index: {}]   ;;  %s2140_s8 = inlined_call_operand.hbm [shape: f32[16,128], index: 8, kind: output, shape index: {}]  }
   0x1   :  { %14 = vsyncpa [#allocation4], 0  ;;  %s31_s29 = sshll.u32 %s2138_s6, 4  ;;  %s1672_s30 = smov [#allocation2]   ;;  %s32_s29 = int_to_ptr.hbm [resolvable:$true] %s31_s29 }
   0x2   :  { %s33_s9 = sshll.u32 %s1672_s30, 4  ;;  %s1673_s10 = smov 64   ;;  %s34_s9 = int_to_ptr.vmem [resolvable:$true] %s33_s9 }
   0x3   :  { %s1674_s11 = smov 4  }
   0x4   :  { %39 = dma.hbm_to_vmem [thread:$0]  %s32_s29, 2048, %s34_s9, [#allocation3], %s1673_s10, %s1673_s10, %s1674_s11  }
   0x5   :  { %1668 = dma.done.wait [#allocation3], 2048  }
   0x6   :  { %1669 = vsyncadd [#allocation3], 4294965248  ;;  %v1311_v0 = vld [vmem:[%s2135_s3 + $0x70] sm:$0xf]  ;;  %v1496_v1 = vld [vmem:[%s2135_s3 + $0x74] sm:$0xf0] }
   0x7   :  { %v1303_v2 = vld [vmem:[%s2135_s3 + $0x60] sm:$0xf]  ;;  %v1312_v3 = vor.u32 %v1496_v1, %v1311_v0  ;;  %v1494_v4 = vld [vmem:[%s2135_s3 + $0x64] sm:$0xf0]  ;;  %v1295_v6 = vld [vmem:[%s2135_s3 + $0x50] sm:$0xf] }
   0x8   :  { %v1304_v5 = vor.u32 %v1494_v4, %v1303_v2  ;;  %v1492_v7 = vld [vmem:[%s2135_s3 + $0x54] sm:$0xf0]  ;;  %v1287_v9 = vld [vmem:[%s2135_s3 + $0x40] sm:$0xf]  ;;  %v1490_v10 = vld [vmem:[%s2135_s3 + $0x44] sm:$0xf0] }
   0x9   :  { %150 = vmatpush.bf16.msra.mxu0 %v1312_v3  ;;  %v1296_v8 = vor.u32 %v1492_v7, %v1295_v6  ;;  %v1288_v11 = vor.u32 %v1490_v10, %v1287_v9  ;;  %v1279_v12 = vld [vmem:[%s2135_s3 + $0x30] sm:$0xf]  ;;  %v1488_v13 = vld [vmem:[%s2135_s3 + $0x34] sm:$0xf0]  ;;  %v1271_v15 = vld [vmem:[%s2135_s3 + $0x20] sm:$0xf] }
   0xa   :  { %v1280_v14 = vor.u32 %v1488_v13, %v1279_v12  ;;  %v1486_v16 = vld [vmem:[%s2135_s3 + $0x24] sm:$0xf0]  ;;  %v1263_v18 = vld [vmem:[%s2135_s3 + $0x10] sm:$0xf]  ;;  %v1484_v19 = vld [vmem:[%s2135_s3 + $0x14] sm:$0xf0] }
   0xb   :  { %v1272_v17 = vor.u32 %v1486_v16, %v1271_v15  ;;  %v1264_v20 = vor.u32 %v1484_v19, %v1263_v18  ;;  %v1255_v21 = vld [vmem:[%s2135_s3] sm:$0xf]  ;;  %v1482_v22 = vld [vmem:[%s2135_s3 + $0x4] sm:$0xf0]  ;;  %s1676_s27 = smov 112   ;;  %s1677_s28 = smov 96  }
   0xc   :  { %v1256_v23 = vor.u32 %v1482_v22, %v1255_v21  ;;  %v1785_v24 = vld [vmem:[%s2132_s0] sm:$0xff]  ;;  %v1790_v25 = vld [vmem:[%s2132_s0 + $0x8] sm:$0xff]  ;;  %s1675_s0 = smov 80   ;;  %vm248_vm0 = vcmask 130048   ;;  %v1495_v7 = vld [vmem:[%s2135_s3 + $0x74] sm:$0xf] }
   0xd   :  { %151 = vmatpush.bf16.msra.mxu0 %v1304_v5  ;;  %v1794_v26 = vpack.c.bf16 %v1790_v25, %v1785_v24  ;;  %v1800_v27 = vld [vmem:[%s2139_s7] sm:$0xff]  ;;  %v1491_v13 = vld [vmem:[%s2135_s3 + $0x54] sm:$0xf]  ;;  %vm436_vm2 = vcmask 64512   ;;  %vm536_vm3 = vcmask 1043456  }
   0xe   :  { %v68_v28 = vperm.slane %v1800_v27, 0  ;;  %v1493_v10 = vld [vmem:[%s2135_s3 + $0x64] sm:$0xf]  ;;  %v1487_v19 = vld [vmem:[%s2135_s3 + $0x34] sm:$0xf] }
   0xf   :  { %v1489_v16 = vld [vmem:[%s2135_s3 + $0x44] sm:$0xf] }
  0x10   :  { %v1485_v22 = vld [vmem:[%s2135_s3 + $0x24] sm:$0xf] }
  0x11   :  { %152 = vmatpush.bf16.msra.mxu0 %v1296_v8  ;;  %v1313_v8 = vld [vmem:[%s2135_s3 + $0x78] sm:$0xf0] }
  0x12   :  { %v1316_v9 = vor.u32 %v1495_v7, %v1313_v8 }
  0x14   :  { %164 = vmatpush.bf16.msra.mxu1 %v1316_v9 }
  0x15   :  { %153 = vmatpush.bf16.msra.mxu0 %v1288_v11  ;;  %v1305_v11 = vld [vmem:[%s2135_s3 + $0x68] sm:$0xf0] }
  0x16   :  { %v1308_v12 = vor.u32 %v1493_v10, %v1305_v11 }
  0x18   :  { %165 = vmatpush.bf16.msra.mxu1 %v1308_v12 }
  0x19   :  { %154 = vmatpush.bf16.msra.mxu0 %v1280_v14  ;;  %v1297_v14 = vld [vmem:[%s2135_s3 + $0x58] sm:$0xf0] }
  0x1a   :  { %v1300_v15 = vor.u32 %v1491_v13, %v1297_v14 }
  0x1c   :  { %166 = vmatpush.bf16.msra.mxu1 %v1300_v15 }
  0x1d   :  { %155 = vmatpush.bf16.msra.mxu0 %v1272_v17  ;;  %v1289_v17 = vld [vmem:[%s2135_s3 + $0x48] sm:$0xf0] }
  0x1e   :  { %v1292_v18 = vor.u32 %v1489_v16, %v1289_v17 }
  0x20   :  { %167 = vmatpush.bf16.msra.mxu1 %v1292_v18 }
  0x21   :  { %156 = vmatpush.bf16.msra.mxu0 %v1264_v20  ;;  %v1281_v20 = vld [vmem:[%s2135_s3 + $0x38] sm:$0xf0] }
  0x22   :  { %v1284_v21 = vor.u32 %v1487_v19, %v1281_v20 }
  0x24   :  { %168 = vmatpush.bf16.msra.mxu1 %v1284_v21 }
  0x25   :  { %157 = vmatpush.bf16.msra.mxu0 %v1256_v23  ;;  %v1273_v23 = vld [vmem:[%s2135_s3 + $0x28] sm:$0xf0] }
  0x28   :  { %158 = vmatmul.bf16.vlgmr.msra.gmra.mxu0 %v1794_v26 }
  0xa5   :  { %v159_v29 = vpop.f32.mrf.mxu0 }
  0xa6   :  { %v160_v30 = vadd.f32 %v159_v29, %v68_v28  ;;  %v1483_v29 = vld [vmem:[%s2135_s3 + $0x14] sm:$0xf] }
  0xa8   :  { %v198_v31 = vpack.c.bf16 %v160_v30, %v160_v30 }
  0xaa   :  { %v244_v32 = vunpack.c.l.b16 %v198_v31 }
  0xac   :  { %v245_v33 = vpack.c.b16 %v244_v32, %v244_v32  ;;  %v1481_v32 = vld [vmem:[%s2135_s3 + $0x4] sm:$0xf] }
  0xad   :  { %v161_v34 = vpop.f32.mrf.mxu0 }
  0xae   :  { %v162_v35 = vadd.f32 %v161_v34, %v68_v28  ;;  %246 = vrot.lane.b32.xlu1 %v245_v33, %s1673_s10  ;;  %v1276_v28 = vor.u32 %v1485_v22, %v1273_v23  ;;  %v1257_v33 = vld [vmem:[%s2135_s3 + $0x8] sm:$0xf0] }
  0xaf   :  { %v1260_v34 = vor.u32 %v1481_v32, %v1257_v33 }
  0xb0   :  { %v1555_v36 = vpack.i.bf16 %v162_v35, %v160_v30  ;;  %v199_v37 = vpack.c.bf16 %v162_v35, %v162_v35  ;;  %169 = vmatpush.bf16.msra.mxu1 %v1276_v28  ;;  %v1265_v30 = vld [vmem:[%s2135_s3 + $0x18] sm:$0xf0]  ;;  %s1682_s3 = smov 128  }
  0xb2   :  { %1556 = vrot.lane.b32.xlu2 %v1555_v36, %s1675_s0  ;;  %1546 = vrot.lane.b32.xlu0 %v1555_v36, %s1676_s27  ;;  %v269_v38 = vunpack.c.l.b16 %v199_v37 }
  0xb4   :  { %v270_v39 = vpack.c.b16 %v269_v38, %v269_v38 }
  0xb6   :  { %271 = vrot.lane.b32.xlu1 %v270_v39, %s1673_s10 }
  0xba   :  { %1551 = vrot.lane.b32.xlu0 %v1555_v36, %s1677_s28 }
 0x10c   :  { %v1557_v42 = vpop.permute.xlu2 %1556 }
 0x10d   :  { %v1558_v46 = vunpack.i.l.bf16 %v1557_v42  ;;  %v1559_v62 = vunpack.i.h.bf16 %v1557_v42  ;;  %v1678_v42 = vmov 0.0  }
 0x10f   :  { %v1817_v53 = vpack.c.bf16 %v1558_v46, %v1558_v46  ;;  %v1829_v4 = vpack.c.bf16 %v1559_v62, %v1559_v62 }
 0x111   :  { %v389_v61 = vunpack.c.l.b16 %v1817_v53  ;;  %v413_v5 = vunpack.c.l.b16 %v1829_v4 }
 0x113   :  { %v390_v1 = vpack.c.b16 %v389_v61, %v389_v61  ;;  %v414_v6 = vpack.c.b16 %v413_v5, %v413_v5 }
 0x120   :  { %v247_v40 = vpop.permute.xlu1 %246 }
 0x121   :  { %v253_v41 = vsel %vm248_vm0, %v247_v40, 0  ;;  %v234_v40 = vld [vmem:[%s2133_s1] sm:$0x3]  ;;  %s1240_s1 = sshll.u32 %s2140_s8, 4  ;;  %s1241_s1 = int_to_ptr.hbm [resolvable:$true] %s1240_s1 }
 0x122   :  { %262 = vmatpush.bf16.xpose.msra.mxu2 %v253_v41  ;;  %vm235_vm1 = vcmp.gt.f32.partialorder %v234_v40, 0.0 }
 0x124   :  { %v1547_v43 = vpop.permute.xlu0 %1546 }
 0x125   :  { %v1549_v44 = vunpack.i.h.bf16 %v1547_v43  ;;  %v1548_v45 = vunpack.i.l.bf16 %v1547_v43  ;;  %v236_v43 = vsel %vm235_vm1, -1e+30, %v1678_v42 }
 0x127   :  { %v1809_v47 = vpack.c.bf16 %v1549_v44, %v1549_v44  ;;  %v1811_v48 = vpack.c.bf16 %v1548_v45, %v1548_v45 }
 0x128   :  { %v272_v49 = vpop.permute.xlu1 %271 }
 0x129   :  { %1317 = vmatmul.msk.bf16.vlgmr.msra.gmra.mxu2 %vm248_vm0, %v198_v31  ;;  %v277_v50 = vsel %vm248_vm0, %v272_v49, 0  ;;  %v317_v51 = vunpack.c.l.b16 %v1809_v47  ;;  %v293_v52 = vunpack.c.l.b16 %v1811_v48  ;;  %v1268_v31 = vor.u32 %v1483_v29, %v1265_v30 }
 0x12a   :  { %286 = vmatpush.bf16.xpose.msra.mxu3 %v277_v50 }
 0x12b   :  { %v318_v54 = vpack.c.b16 %v317_v51, %v317_v51  ;;  %v294_v55 = vpack.c.b16 %v293_v52, %v293_v52  ;;  %170 = vmatpush.bf16.msra.mxu1 %v1268_v31  ;;  %v238_v51 = vrot.slane %v236_v43, 1 }
 0x12c   :  { %v1552_v56 = vpop.permute.xlu0 %1551 }
 0x12d   :  { %v1554_v57 = vunpack.i.h.bf16 %v1552_v56  ;;  %v1553_v58 = vunpack.i.l.bf16 %v1552_v56  ;;  %319 = vrot.lane.b32.xlu0 %v318_v54, %s1673_s10  ;;  %295 = vrot.lane.b32.xlu2 %v294_v55, %s1673_s10  ;;  %v240_v55 = vperm.slane %v238_v51, 0 }
 0x12f   :  { %v1821_v59 = vpack.c.bf16 %v1554_v57, %v1554_v57  ;;  %v1823_v60 = vpack.c.bf16 %v1553_v58, %v1553_v58  ;;  %171 = vmatpush.bf16.msra.mxu1 %v1260_v34 }
 0x131   :  { %1318 = vmatmul.msk.bf16.vlgmr.msra.gmra.mxu3 %vm248_vm0, %v199_v37  ;;  %v365_v63 = vunpack.c.l.b16 %v1821_v59  ;;  %v341_v0 = vunpack.c.l.b16 %v1823_v60 }
 0x132   :  { %172 = vmatmul.bf16.vlgmr.msra.gmra.mxu1 %v1794_v26 }
 0x133   :  { %v366_v2 = vpack.c.b16 %v365_v63, %v365_v63  ;;  %v342_v3 = vpack.c.b16 %v341_v0, %v341_v0 }
 0x135   :  { %391 = vrot.lane.b32.xlu0 %v390_v1, %s1673_s10  ;;  %367 = vrot.lane.b32.xlu2 %v366_v2, %s1673_s10 }
 0x136   :  { %343 = vrot.lane.b32.xlu1 %v342_v3, %s1673_s10 }
 0x13e   :  { %415 = vrot.lane.b32.xlu1 %v414_v6, %s1673_s10 }
 0x187   :  { %v296_v35 = vpop.permute.xlu2 %295 }
 0x188   :  { %v301_v36 = vsel %vm248_vm0, %v296_v35, 0 }
 0x189   :  { %310 = vmatpush.bf16.xpose.msrb.mxu2 %v301_v36 }
 0x18f   :  { %v368_v37 = vpop.permute.xlu2 %367 }
 0x190   :  { %1319 = vmatmul.msk.bf16.vlgmr.msrb.gmra.mxu2 %vm248_vm0, %v1811_v48  ;;  %v373_v41 = vsel %vm248_vm0, %v368_v37, 0  ;;  %v239_v48 = vperm.slane %v236_v43, 0 }
 0x19f   :  { %v320_v38 = vpop.permute.xlu0 %319 }
 0x1a0   :  { %v325_v39 = vsel %vm248_vm0, %v320_v38, 0 }
 0x1a1   :  { %334 = vmatpush.bf16.xpose.msrb.mxu3 %v325_v39 }
 0x1a7   :  { %v392_v44 = vpop.permute.xlu0 %391 }
 0x1a8   :  { %v344_v26 = vpop.permute.xlu1 %343  ;;  %1320 = vmatmul.msk.bf16.vlgmr.msrb.gmra.mxu3 %vm248_vm0, %v1809_v47  ;;  %v397_v45 = vsel %vm248_vm0, %v392_v44, 0 }
 0x1a9   :  { %382 = vmatpush.bf16.xpose.msra.mxu3 %v373_v41  ;;  %v349_v46 = vsel %vm248_vm0, %v344_v26, 0  ;;  %406 = vmatpush.bf16.xpose.msrb.mxu0 %v397_v45 }
 0x1aa   :  { %358 = vmatpush.bf16.xpose.msra.mxu2 %v349_v46 }
 0x1ac   :  { %v264_v49 = vpop.f32.mrf.mxu2 }
 0x1ad   :  { %v265_v50 = vadd.f32 %v264_v49, %v239_v48 }
 0x1af   :  { %v437_v52 = vsel %vm436_vm2, %v265_v50, -inf  ;;  %v173_v62 = vpop.f32.mrf.mxu1 }
 0x1b0   :  { %v416_v54 = vpop.permute.xlu1 %415  ;;  %1323 = vmatmul.msk.bf16.vlgmr.msrb.gmra.mxu0 %vm248_vm0, %v1817_v53  ;;  %438 = vmax.xlane.f32.xlu2 %v437_v52 }
 0x1b1   :  { %1321 = vmatmul.msk.bf16.vlgmr.msra.gmra.mxu2 %vm248_vm0, %v1823_v60  ;;  %v421_v47 = vsel %vm248_vm0, %v416_v54, 0  ;;  %v1911_v60 = vld [vmem:[%s2139_s7 + $0x8] sm:$0xff] }
 0x1b2   :  { %430 = vmatpush.bf16.xpose.msrb.mxu1 %v421_v47  ;;  %v69_v63 = vperm.slane %v1911_v60, 0 }
 0x1b4   :  { %v266_v56 = vpop.f32.mrf.mxu2  ;;  %v288_v57 = vpop.f32.mrf.mxu3  ;;  %v174_v2 = vadd.f32 %v173_v62, %v69_v63 }
 0x1b5   :  { %v289_v58 = vadd.f32 %v288_v57, %v240_v55 }
 0x1b6   :  { %v226_v6 = vpack.c.bf16 %v174_v2, %v174_v2 }
 0x1b7   :  { %v440_v61 = vsel %vm436_vm2, %v289_v58, -inf  ;;  %v175_v0 = vpop.f32.mrf.mxu1 }
 0x1b8   :  { %1322 = vmatmul.msk.bf16.vlgmr.msra.gmra.mxu3 %vm248_vm0, %v1821_v59  ;;  %441 = vmax.xlane.f32.xlu0 %v440_v61  ;;  %v176_v3 = vadd.f32 %v175_v0, %v69_v63  ;;  %v538_v8 = vsel %vm536_vm3, %v226_v6, 0 }
 0x1b9   :  { %1324 = vmatmul.msk.bf16.vlgmr.msrb.gmra.mxu1 %vm248_vm0, %v1829_v4  ;;  %547 = vmatpush.bf16.msrb.mxu2 %v538_v8 }
 0x1ba   :  { %v227_v7 = vpack.c.bf16 %v176_v3, %v176_v3  ;;  %v1915_v4 = vpack.i.bf16 %v176_v3, %v174_v2 }
 0x1bc   :  { %v290_v53 = vpop.f32.mrf.mxu3  ;;  %v557_v9 = vsel %vm536_vm3, %v227_v7, 0 }
 0x1bd   :  { %566 = vmatpush.bf16.msrb.mxu3 %v557_v9 }
 0x213   :  { %v312_v1 = vpop.f32.mrf.mxu2 }
 0x214   :  { %v313_v5 = vadd.f32 %v312_v1, %v239_v48 }
 0x216   :  { %v443_v59 = vsel %vm436_vm2, %v313_v5, -inf }
 0x217   :  { %444 = vmax.xlane.f32.xlu1 %v443_v59 }
 0x21b   :  { %v314_v10 = vpop.f32.mrf.mxu2 }
 0x223   :  { %v439_v20 = vpop.xlane.xlu2 %438 }
 0x224   :  { %v461_v23 = vsub.f32 %v265_v50, %v439_v20 }
 0x226   :  { %v469_v34 = vmul.f32 1.442695, %v461_v23 }
 0x22b   :  { %v336_v11 = vpop.f32.mrf.mxu3  ;;  %v442_v12 = vpop.xlane.xlu0 %441 }
 0x22c   :  { %v337_v13 = vadd.f32 %v336_v11, %v240_v55  ;;  %v462_v14 = vsub.f32 %v289_v58, %v442_v12 }
 0x22d   :  { %v408_v15 = vpop.f32.mrf.mxu0 }
 0x22e   :  { %v471_v16 = vmul.f32 1.442695, %v462_v14  ;;  %v409_v17 = vadd.f32 %v408_v15, %v239_v48  ;;  %v446_v18 = vsel %vm436_vm2, %v337_v13, -inf }
 0x22f   :  { %447 = vmax.xlane.f32.xlu2 %v446_v18 }
 0x230   :  { %1577 = vpow2.f32 %v471_v16  ;;  %v455_v19 = vsel %vm436_vm2, %v409_v17, -inf }
 0x231   :  { %456 = vmax.xlane.f32.xlu1 %v455_v19  ;;  %1579 = vpow2.f32 %v469_v34 }
 0x233   :  { %v338_v21 = vpop.f32.mrf.mxu3 }
 0x234   :  { %v360_v22 = vpop.f32.mrf.mxu2 }
 0x235   :  { %v361_v28 = vadd.f32 %v360_v22, %v239_v48  ;;  %v410_v29 = vpop.f32.mrf.mxu0 }
 0x236   :  { %v1578_v30 = vpop.eup %1577  ;;  %v432_v31 = vpop.f32.mrf.mxu1 }
 0x237   :  { %v449_v32 = vsel %vm436_vm2, %v361_v28, -inf  ;;  %v488_v33 = vsel %vm436_vm2, %v1578_v30, 0.0  ;;  %v433_v35 = vadd.f32 %v432_v31, %v240_v55  ;;  %v1580_v42 = vpop.eup %1579 }
 0x238   :  { %450 = vmax.xlane.f32.xlu2 %v449_v32  ;;  %v485_v44 = vsel %vm436_vm2, %v1580_v42, 0.0 }
 0x239   :  { %489 = vadd.xlane.f32.xlu1 %v488_v33  ;;  %v458_v41 = vsel %vm436_vm2, %v433_v35, -inf }
 0x23b   :  { %v384_v36 = vpop.f32.mrf.mxu3 }
 0x23c   :  { %v362_v37 = vpop.f32.mrf.mxu2  ;;  %v385_v38 = vadd.f32 %v384_v36, %v240_v55 }
 0x23e   :  { %v434_v39 = vpop.f32.mrf.mxu1  ;;  %v452_v40 = vsel %vm436_vm2, %v385_v38, -inf }
 0x23f   :  { %453 = vmax.xlane.f32.xlu0 %v452_v40 }
 0x240   :  { %459 = vmax.xlane.f32.xlu2 %v458_v41 }
 0x243   :  { %v386_v43 = vpop.f32.mrf.mxu3 }
 0x247   :  { %486 = vadd.xlane.f32.xlu0 %v485_v44 }
 0x252   :  { %1561 = vrot.lane.b32.xlu1 %v1915_v4, %s1676_s27 }
 0x25a   :  { %1571 = vrot.lane.b32.xlu1 %v1915_v4, %s1675_s0  ;;  %s1683_s0 = smov 8  }
 0x28a   :  { %v445_v26 = vpop.xlane.xlu1 %444 }
 0x28b   :  { %v463_v45 = vsub.f32 %v313_v5, %v445_v26 }
 0x28d   :  { %v473_v46 = vmul.f32 1.442695, %v463_v45 }
 0x28f   :  { %1581 = vpow2.f32 %v473_v46 }
 0x295   :  { %v1930_v48 = vpop.eup %1581 }
 0x296   :  { %v491_v49 = vsel %vm436_vm2, %v1930_v48, 0.0 }
 0x297   :  { %492 = vadd.xlane.f32.xlu2 %v491_v49 }
 0x2a2   :  { %v448_v50 = vpop.xlane.xlu2 %447 }
 0x2a3   :  { %v464_v51 = vsub.f32 %v337_v13, %v448_v50 }
 0x2a4   :  { %v457_v52 = vpop.xlane.xlu1 %456 }
 0x2a5   :  { %v475_v54 = vmul.f32 1.442695, %v464_v51  ;;  %v467_v47 = vsub.f32 %v409_v17, %v457_v52 }
 0x2a7   :  { %1583 = vpow2.f32 %v475_v54  ;;  %v481_v55 = vmul.f32 1.442695, %v467_v47 }
 0x2a9   :  { %1585 = vpow2.f32 %v481_v55 }
 0x2ab   :  { %v451_v56 = vpop.xlane.xlu2 %450 }
 0x2ac   :  { %v465_v57 = vsub.f32 %v361_v28, %v451_v56  ;;  %v490_v58 = vpop.xlane.xlu1 %489 }
 0x2ad   :  { %v1934_v61 = vpop.eup %1583  ;;  %1587 = vrcp.f32 %v490_v58  ;;  %v1497_v58 = vld [vmem:[%s2136_s4] sm:$0xff] }
 0x2ae   :  { %v477_v53 = vmul.f32 1.442695, %v465_v57  ;;  %v494_v62 = vsel %vm436_vm2, %v1934_v61, 0.0 }
 0x2af   :  { %495 = vadd.xlane.f32.xlu0 %v494_v62  ;;  %v1938_v63 = vpop.eup %1585 }
 0x2b0   :  { %1589 = vpow2.f32 %v477_v53  ;;  %v503_v9 = vsel %vm436_vm2, %v1938_v63, 0.0 }
 0x2b2   :  { %v454_v0 = vpop.xlane.xlu0 %453 }
 0x2b3   :  { %v1588_v1 = vpop.eup %1587  ;;  %v466_v2 = vsub.f32 %v385_v38, %v454_v0  ;;  %v460_v3 = vpop.xlane.xlu2 %459 }
 0x2b4   :  { %v518_v5 = vmul.f32 %v1588_v1, %v1578_v30  ;;  %v468_v6 = vsub.f32 %v433_v35, %v460_v3 }
 0x2b5   :  { %v479_v59 = vmul.f32 1.442695, %v466_v2 }
 0x2b6   :  { %v1940_v7 = vpop.eup %1589  ;;  %v526_v8 = vpack.c.bf16 %v518_v5, %v518_v5  ;;  %v483_v11 = vmul.f32 1.442695, %v468_v6 }
 0x2b7   :  { %1591 = vpow2.f32 %v479_v59  ;;  %v497_v10 = vsel %vm436_vm2, %v1940_v7, 0.0  ;;  %504 = vadd.xlane.f32.xlu0 %v503_v9 }
 0x2b8   :  { %498 = vadd.xlane.f32.xlu2 %v497_v10  ;;  %1326 = vmatmul.msk.bf16.vlgmr.msrb.gmra.mxu3 %vm436_vm2, %v526_v8 }
 0x2ba   :  { %v487_v12 = vpop.xlane.xlu0 %486 }
 0x2bb   :  { %1593 = vrcp.f32 %v487_v12 }
 0x2bc   :  { %1595 = vpow2.f32 %v483_v11 }
 0x2bd   :  { %v1947_v13 = vpop.eup %1591 }
 0x2be   :  { %v500_v14 = vsel %vm436_vm2, %v1947_v13, 0.0 }
 0x2bf   :  { %501 = vadd.xlane.f32.xlu0 %v500_v14 }
 0x2c1   :  { %v1594_v15 = vpop.eup %1593 }
 0x2c2   :  { %v517_v16 = vmul.f32 %v1594_v15, %v1580_v42  ;;  %v1951_v17 = vpop.eup %1595  ;;  %v1498_v15 = vld [vmem:[%s2136_s4 + $0x8] sm:$0xff] }
 0x2c3   :  { %v506_v22 = vsel %vm436_vm2, %v1951_v17, 0.0 }
 0x2c4   :  { %v525_v18 = vpack.c.bf16 %v517_v16, %v517_v16  ;;  %v1562_v19 = vpop.permute.xlu1 %1561 }
 0x2c5   :  { %v1564_v20 = vunpack.i.h.bf16 %v1562_v19  ;;  %v1563_v21 = vunpack.i.l.bf16 %v1562_v19  ;;  %v1500_v19 = vld [vmem:[%s2136_s4 + $0x18] sm:$0xff] }
 0x2c6   :  { %1325 = vmatmul.msk.bf16.vlgmr.msrb.gmra.mxu2 %vm436_vm2, %v525_v18  ;;  %v1499_v18 = vld [vmem:[%s2136_s4 + $0x10] sm:$0xff] }
 0x2c7   :  { %v229_v23 = vpack.c.bf16 %v1564_v20, %v1564_v20  ;;  %v228_v28 = vpack.c.bf16 %v1563_v21, %v1563_v21  ;;  %507 = vadd.xlane.f32.xlu0 %v506_v22 }
 0x2c9   :  { %v576_v29 = vsel %vm536_vm3, %v228_v28, 0  ;;  %v595_v30 = vsel %vm536_vm3, %v229_v23, 0 }
 0x2ca   :  { %585 = vmatpush.bf16.msra.mxu0 %v576_v29  ;;  %604 = vmatpush.bf16.msra.mxu1 %v595_v30 }
 0x2cc   :  { %v1572_v31 = vpop.permute.xlu1 %1571 }
 0x2cd   :  { %v1574_v32 = vunpack.i.h.bf16 %v1572_v31  ;;  %v1573_v33 = vunpack.i.l.bf16 %v1572_v31 }
 0x2cf   :  { %v233_v34 = vpack.c.bf16 %v1574_v32, %v1574_v32  ;;  %v232_v35 = vpack.c.bf16 %v1573_v33, %v1573_v33 }
 0x2d0   :  { %1566 = vrot.lane.b32.xlu2 %v1915_v4, %s1677_s28 }
 0x2d1   :  { %v652_v36 = vsel %vm536_vm3, %v232_v35, 0  ;;  %v671_v37 = vsel %vm536_vm3, %v233_v34, 0 }
 0x2d2   :  { %661 = vmatpush.bf16.msrb.mxu0 %v652_v36  ;;  %680 = vmatpush.bf16.msrb.mxu1 %v671_v37 }
 0x30a   :  { %v493_v38 = vpop.xlane.xlu2 %492 }
 0x30b   :  { %1597 = vrcp.f32 %v493_v38 }
 0x311   :  { %v1598_v39 = vpop.eup %1597 }
 0x312   :  { %v519_v40 = vmul.f32 %v1598_v39, %v1930_v48 }
 0x314   :  { %v527_v41 = vpack.c.bf16 %v519_v40, %v519_v40 }
 0x316   :  { %1327 = vmatmul.msk.bf16.vlgmr.msra.gmra.mxu0 %vm436_vm2, %v527_v41 }
 0x317   :  { %779 = vmatpush.bf16.msra.mxu0 %v1499_v18  ;;  %v1515_v18 = vld [vmem:[%s2137_s5 + $0x74] sm:$0xf] }
 0x322   :  { %v496_v42 = vpop.xlane.xlu0 %495 }
 0x323   :  { %1599 = vrcp.f32 %v496_v42 }
 0x329   :  { %v1600_v43 = vpop.eup %1599 }
 0x32a   :  { %v520_v44 = vmul.f32 %v1600_v43, %v1934_v61  ;;  %v505_v4 = vpop.xlane.xlu0 %504 }
 0x32b   :  { %v499_v26 = vpop.xlane.xlu2 %498  ;;  %1601 = vrcp.f32 %v505_v4 }
 0x32c   :  { %v528_v45 = vpack.c.bf16 %v520_v44, %v520_v44  ;;  %1603 = vrcp.f32 %v499_v26 }
 0x32e   :  { %1328 = vmatmul.msk.bf16.vlgmr.msra.gmra.mxu1 %vm436_vm2, %v528_v45 }
 0x32f   :  { %807 = vmatpush.bf16.msra.mxu1 %v1500_v19 }
 0x331   :  { %v1602_v46 = vpop.eup %1601 }
 0x332   :  { %v523_v49 = vmul.f32 %v1602_v46, %v1938_v63  ;;  %v502_v50 = vpop.xlane.xlu0 %501  ;;  %v1604_v48 = vpop.eup %1603 }
 0x333   :  { %v1567_v51 = vpop.permute.xlu2 %1566  ;;  %1605 = vrcp.f32 %v502_v50  ;;  %v521_v55 = vmul.f32 %v1604_v48, %v1940_v7  ;;  %v814_v50 = vperm.slane %v1800_v27, 1 }
 0x334   :  { %v531_v52 = vpack.c.bf16 %v523_v49, %v523_v49  ;;  %v1569_v54 = vunpack.i.h.bf16 %v1567_v51  ;;  %v1568_v47 = vunpack.i.l.bf16 %v1567_v51 }
 0x335   :  { %v529_v63 = vpack.c.bf16 %v521_v55, %v521_v55 }
 0x336   :  { %v231_v56 = vpack.c.bf16 %v1569_v54, %v1569_v54  ;;  %v230_v57 = vpack.c.bf16 %v1568_v47, %v1568_v47  ;;  %1331 = vmatmul.msk.bf16.vlgmr.msrb.gmra.mxu0 %vm436_vm2, %v531_v52 }
 0x338   :  { %v614_v61 = vsel %vm536_vm3, %v230_v57, 0  ;;  %v633_v53 = vsel %vm536_vm3, %v231_v56, 0 }
 0x339   :  { %v1606_v62 = vpop.eup %1605  ;;  %623 = vmatpush.bf16.msra.mxu2 %v614_v61  ;;  %642 = vmatpush.bf16.msra.mxu3 %v633_v53 }
 0x33a   :  { %v522_v0 = vmul.f32 %v1606_v62, %v1947_v13  ;;  %v508_v1 = vpop.xlane.xlu0 %507 }
 0x33b   :  { %1607 = vrcp.f32 %v508_v1  ;;  %v568_v2 = vpop.f32.mrf.mxu3 }
 0x33c   :  { %v530_v3 = vpack.c.bf16 %v522_v0, %v522_v0  ;;  %1329 = vmatmul.msk.bf16.vlgmr.msra.gmra.mxu2 %vm436_vm2, %v529_v63  ;;  %v687_v8 = vpack.c.bf16 %v568_v2, %v568_v2 }
 0x33d   :  { %723 = vmatpush.bf16.msrb.mxu2 %v1497_v58  ;;  %751 = vmatpush.bf16.msrb.mxu3 %v1498_v15 }
 0x33e   :  { %1330 = vmatmul.msk.bf16.vlgmr.msra.gmra.mxu3 %vm436_vm2, %v530_v3  ;;  %v705_v11 = vunpack.c.l.b16 %v687_v8  ;;  %v1679_v3 = vmov 128.0  }
 0x33f   :  { %1609 = vrcp.f32 %v1679_v3 }
 0x341   :  { %v1608_v5 = vpop.eup %1607 }
 0x342   :  { %v524_v59 = vmul.f32 %v1608_v5, %v1951_v17 }
 0x343   :  { %v570_v6 = vpop.f32.mrf.mxu3 }
 0x344   :  { %v532_v7 = vpack.c.bf16 %v524_v59, %v524_v59 }
 0x345   :  { %v1610_v5 = vpop.eup %1609 }
 0x346   :  { %1332 = vmatmul.msk.bf16.vlgmr.msrb.gmra.mxu1 %vm436_vm2, %v532_v7  ;;  %v830_v59 = vmul.f32 128.0, %v1610_v5  ;;  %vm834_vm4 = vweird.f32 %v1610_v5 }
 0x348   :  { %v831_v6 = vsub.f32 1.0, %v830_v59 }
 0x349   :  { %v549_v9 = vpop.f32.mrf.mxu2 }
 0x34a   :  { %v686_v10 = vpack.c.bf16 %v549_v9, %v549_v9  ;;  %v832_v7 = vmul.f32 %v1610_v5, %v831_v6  ;;  %v1524_v6 = vld [vmem:[#allocation2 + $0x38] sm:$0xff] }
 0x34b   :  { %1140 = vmatpush.bf16.msrb.mxu0 %v1524_v6 }
 0x34c   :  { %v704_v12 = vunpack.c.l.b16 %v686_v10  ;;  %v833_v8 = vadd.f32 %v1610_v5, %v832_v7  ;;  %v1532_v7 = vld [vmem:[#allocation2 + $0x78] sm:$0xff] }
 0x34d   :  { %1154 = vmatpush.bf16.msrb.mxu1 %v1532_v7 }
 0x34e   :  { %v706_v13 = vpack.c.b16 %v705_v11, %v704_v12  ;;  %v1995_v9 = vsel %vm834_vm4, %v1610_v5, %v833_v8 }
 0x350   :  { %1337 = vmatmul.msk.bf16.vlgmr.msrb.gmra.mxu2 %vm248_vm0, %v706_v13 }
 0x351   :  { %v551_v14 = vpop.f32.mrf.mxu2 }
 0x393   :  { %v587_v16 = vpop.f32.mrf.mxu0 }
 0x394   :  { %v688_v20 = vpack.c.bf16 %v587_v16, %v587_v16  ;;  %v1411_v16 = vld [vmem:[%s2137_s5 + $0x70] sm:$0xf] }
 0x396   :  { %v732_v23 = vunpack.c.l.b16 %v688_v20  ;;  %v1413_v20 = vld [vmem:[%s2137_s5 + $0x78] sm:$0xf0] }
 0x39b   :  { %v589_v17 = vpop.f32.mrf.mxu0 }
 0x39c   :  { %v1516_v17 = vld [vmem:[%s2137_s5 + $0x74] sm:$0xf0] }
 0x39d   :  { %v1412_v19 = vor.u32 %v1516_v17, %v1411_v16  ;;  %v1522_v16 = vld [vmem:[#allocation2 + $0x28] sm:$0xff] }
 0x39e   :  { %v1530_v17 = vld [vmem:[#allocation2 + $0x68] sm:$0xff] }
 0x39f   :  { %977 = vmatpush.bf16.msra.mxu2 %v1412_v19 }
 0x3ab   :  { %v606_v21 = vpop.f32.mrf.mxu1 }
 0x3ac   :  { %v689_v22 = vpack.c.bf16 %v606_v21, %v606_v21  ;;  %v1416_v21 = vor.u32 %v1515_v18, %v1413_v20  ;;  %v1521_v20 = vld [vmem:[#allocation2 + $0x20] sm:$0xff] }
 0x3ae   :  { %v733_v28 = vunpack.c.l.b16 %v689_v22  ;;  %991 = vmatpush.bf16.msra.mxu3 %v1416_v21  ;;  %v1403_v22 = vld [vmem:[%s2137_s5 + $0x60] sm:$0xf] }
 0x3af   :  { %v1529_v21 = vld [vmem:[#allocation2 + $0x60] sm:$0xff] }
 0x3b0   :  { %v734_v29 = vpack.c.b16 %v733_v28, %v732_v23  ;;  %v1514_v23 = vld [vmem:[%s2137_s5 + $0x64] sm:$0xf0]  ;;  %v1513_v28 = vld [vmem:[%s2137_s5 + $0x64] sm:$0xf] }
 0x3b2   :  { %1342 = vmatmul.msk.bf16.vlgmr.msrb.gmra.mxu3 %vm248_vm0, %v734_v29  ;;  %v1404_v29 = vor.u32 %v1514_v23, %v1403_v22 }
 0x3b3   :  { %v608_v30 = vpop.f32.mrf.mxu1  ;;  %v663_v31 = vpop.f32.mrf.mxu0 }
 0x3b4   :  { %v692_v36 = vpack.c.bf16 %v663_v31, %v663_v31  ;;  %v1405_v30 = vld [vmem:[%s2137_s5 + $0x68] sm:$0xf0]  ;;  %978 = vmatpush.bf16.msra.mxu2 %v1404_v29 }
 0x3b5   :  { %v1408_v31 = vor.u32 %v1513_v28, %v1405_v30 }
 0x3b6   :  { %v788_v42 = vunpack.c.l.b16 %v692_v36  ;;  %v1397_v36 = vld [vmem:[%s2137_s5 + $0x58] sm:$0xf0] }
 0x3b7   :  { %992 = vmatpush.bf16.msra.mxu3 %v1408_v31 }
 0x3bb   :  { %v665_v32 = vpop.f32.mrf.mxu0 }
 0x3bc   :  { %v1395_v32 = vld [vmem:[%s2137_s5 + $0x50] sm:$0xf] }
 0x3bf   :  { %v625_v33 = vpop.f32.mrf.mxu2 }
 0x3c0   :  { %v690_v34 = vpack.c.bf16 %v625_v33, %v625_v33  ;;  %v1512_v33 = vld [vmem:[%s2137_s5 + $0x54] sm:$0xf0] }
 0x3c1   :  { %v644_v35 = vpop.f32.mrf.mxu3 }
 0x3c2   :  { %v691_v37 = vpack.c.bf16 %v644_v35, %v644_v35  ;;  %v760_v39 = vunpack.c.l.b16 %v690_v34  ;;  %v1511_v34 = vld [vmem:[%s2137_s5 + $0x54] sm:$0xf]  ;;  %v1396_v35 = vor.u32 %v1512_v33, %v1395_v32 }
 0x3c3   :  { %v682_v38 = vpop.f32.mrf.mxu1 }
 0x3c4   :  { %v761_v40 = vunpack.c.l.b16 %v691_v37  ;;  %v693_v41 = vpack.c.bf16 %v682_v38, %v682_v38  ;;  %v1400_v37 = vor.u32 %v1511_v34, %v1397_v36  ;;  %979 = vmatpush.bf16.msra.mxu2 %v1396_v35  ;;  %v1387_v38 = vld [vmem:[%s2137_s5 + $0x40] sm:$0xf] }
 0x3c5   :  { %v2109_v35 = vld [vmem:[%s2139_s7] sm:$0xff] }
 0x3c6   :  { %v762_v43 = vpack.c.b16 %v761_v40, %v760_v39  ;;  %v789_v44 = vunpack.c.l.b16 %v693_v41  ;;  %993 = vmatpush.bf16.msra.mxu3 %v1400_v37  ;;  %v1510_v39 = vld [vmem:[%s2137_s5 + $0x44] sm:$0xf0]  ;;  %v1509_v40 = vld [vmem:[%s2137_s5 + $0x44] sm:$0xf]  ;;  %v872_v36 = vperm.slane %v2109_v35, 2 }
 0x3c7   :  { %v627_v4 = vpop.f32.mrf.mxu2  ;;  %v1388_v41 = vor.u32 %v1510_v39, %v1387_v38 }
 0x3c8   :  { %v790_v26 = vpack.c.b16 %v789_v44, %v788_v42  ;;  %1347 = vmatmul.msk.bf16.vlgmr.msra.gmra.mxu0 %vm248_vm0, %v762_v43  ;;  %v1389_v42 = vld [vmem:[%s2137_s5 + $0x48] sm:$0xf0]  ;;  %v1379_v44 = vld [vmem:[%s2137_s5 + $0x30] sm:$0xf]  ;;  %v1508_v4 = vld [vmem:[%s2137_s5 + $0x34] sm:$0xf0] }
 0x3c9   :  { %v646_v45 = vpop.f32.mrf.mxu3  ;;  %v1392_v43 = vor.u32 %v1509_v40, %v1389_v42  ;;  %980 = vmatpush.bf16.msra.mxu2 %v1388_v41  ;;  %v875_v41 = vperm.slane %v2109_v35, 3 }
 0x3ca   :  { %1352 = vmatmul.msk.bf16.vlgmr.msra.gmra.mxu1 %vm248_vm0, %v790_v26  ;;  %v1507_v26 = vld [vmem:[%s2137_s5 + $0x34] sm:$0xf]  ;;  %v1380_v45 = vor.u32 %v1508_v4, %v1379_v44  ;;  %v1520_v4 = vld [vmem:[#allocation2 + $0x18] sm:$0xff] }
 0x3cb   :  { %v684_v46 = vpop.f32.mrf.mxu1  ;;  %994 = vmatpush.bf16.msra.mxu3 %v1392_v43 }
 0x3cc   :  { %v1381_v46 = vld [vmem:[%s2137_s5 + $0x38] sm:$0xf0] }
 0x3cd   :  { %981 = vmatpush.bf16.msra.mxu2 %v1380_v45  ;;  %v1519_v45 = vld [vmem:[#allocation2 + $0x10] sm:$0xff] }
 0x3d3   :  { %v725_v49 = vpop.f32.mrf.mxu2 }
 0x3d4   :  { %v815_v51 = vadd.f32 %v814_v50, %v725_v49  ;;  %v1384_v49 = vor.u32 %v1507_v26, %v1381_v46  ;;  %v1528_v26 = vld [vmem:[#allocation2 + $0x58] sm:$0xff]  ;;  %v1527_v46 = vld [vmem:[#allocation2 + $0x50] sm:$0xff] }
 0x3d6   :  { %995 = vmatpush.bf16.msra.mxu3 %v1384_v49  ;;  %v1518_v49 = vld [vmem:[#allocation2 + $0x8] sm:$0xff] }
 0x3db   :  { %v727_v55 = vpop.f32.mrf.mxu2 }
 0x3dc   :  { %v816_v61 = vadd.f32 %v814_v50, %v727_v55  ;;  %v1371_v50 = vld [vmem:[%s2137_s5 + $0x20] sm:$0xf]  ;;  %v1363_v55 = vld [vmem:[%s2137_s5 + $0x10] sm:$0xf] }
 0x435   :  { %v753_v48 = vpop.f32.mrf.mxu3 }
 0x436   :  { %v817_v52 = vadd.f32 %v815_v51, %v753_v48  ;;  %v1506_v48 = vld [vmem:[%s2137_s5 + $0x24] sm:$0xf0]  ;;  %v1505_v51 = vld [vmem:[%s2137_s5 + $0x24] sm:$0xf] }
 0x43d   :  { %v755_v58 = vpop.f32.mrf.mxu3 }
 0x43e   :  { %v818_v62 = vadd.f32 %v816_v61, %v755_v58  ;;  %v1365_v61 = vld [vmem:[%s2137_s5 + $0x18] sm:$0xf0] }
 0x445   :  { %v781_v54 = vpop.f32.mrf.mxu0 }
 0x446   :  { %v819_v47 = vadd.f32 %v817_v52, %v781_v54  ;;  %v1372_v52 = vor.u32 %v1506_v48, %v1371_v50  ;;  %v1373_v54 = vld [vmem:[%s2137_s5 + $0x28] sm:$0xf0]  ;;  %v1525_v48 = vld [vmem:[#allocation2 + $0x40] sm:$0xff] }
 0x447   :  { %v809_v56 = vpop.f32.mrf.mxu1  ;;  %v1526_v50 = vld [vmem:[#allocation2 + $0x48] sm:$0xff] }
 0x448   :  { %v821_v57 = vadd.f32 %v819_v47, %v809_v56  ;;  %v1376_v47 = vor.u32 %v1505_v51, %v1373_v54  ;;  %982 = vmatpush.bf16.msra.mxu2 %v1372_v52  ;;  %v1504_v56 = vld [vmem:[%s2137_s5 + $0x14] sm:$0xf0]  ;;  %v895_v54 = vperm.slane %v2109_v35, 4 }
 0x449   :  { %v1364_v58 = vor.u32 %v1504_v56, %v1363_v55 }
 0x44a   :  { %v823_v53 = vadd.f32 %v821_v57, %v1785_v24  ;;  %996 = vmatpush.bf16.msra.mxu3 %v1376_v47  ;;  %v1503_v57 = vld [vmem:[%s2137_s5 + $0x14] sm:$0xf]  ;;  %v896_v47 = vperm.slane %v1911_v60, 4 }
 0x44c   :  { %825 = vadd.xlane.f32.xlu0 %v823_v53  ;;  %983 = vmatpush.bf16.msra.mxu2 %v1364_v58 }
 0x44d   :  { %v783_v63 = vpop.f32.mrf.mxu0 }
 0x44e   :  { %v820_v0 = vadd.f32 %v818_v62, %v783_v63  ;;  %v1502_v62 = vld [vmem:[%s2137_s5 + $0x4] sm:$0xf0] }
 0x44f   :  { %v811_v1 = vpop.f32.mrf.mxu1 }
 0x450   :  { %v822_v2 = vadd.f32 %v820_v0, %v811_v1  ;;  %v1368_v0 = vor.u32 %v1503_v57, %v1365_v61  ;;  %v1501_v1 = vld [vmem:[%s2137_s5 + $0x4] sm:$0xf] }
 0x452   :  { %v824_v27 = vadd.f32 %v822_v2, %v1790_v25  ;;  %v1357_v2 = vld [vmem:[%s2137_s5 + $0x8] sm:$0xf0]  ;;  %997 = vmatpush.bf16.msra.mxu3 %v1368_v0 }
 0x453   :  { %v1360_v5 = vor.u32 %v1501_v1, %v1357_v2 }
 0x454   :  { %827 = vadd.xlane.f32.xlu1 %v824_v27 }
 0x456   :  { %998 = vmatpush.bf16.msra.mxu3 %v1360_v5 }
 0x4bf   :  { %v826_v24 = vpop.xlane.xlu0 %825 }
 0x4c0   :  { %v836_v10 = vmul.f32 %v1995_v9, %v826_v24 }
 0x4c2   :  { %v1998_v11 = vsub.f32 %v823_v53, %v836_v10  ;;  %v1355_v53 = vld [vmem:[%s2137_s5] sm:$0xf]  ;;  %v1523_v10 = vld [vmem:[#allocation2 + $0x30] sm:$0xff] }
 0x4c3   :  { %v1356_v3 = vor.u32 %v1502_v62, %v1355_v53  ;;  %1141 = vmatpush.bf16.msrb.mxu0 %v1523_v10 }
 0x4c4   :  { %v840_v12 = vmul.f32 %v1998_v11, %v1998_v11 }
 0x4c5   :  { %984 = vmatpush.bf16.msra.mxu2 %v1356_v3  ;;  %v1043_v3 = vperm.slane %v2109_v35, 5 }
 0x4c6   :  { %842 = vadd.xlane.f32.xlu2 %v840_v12  ;;  %v1531_v12 = vld [vmem:[#allocation2 + $0x70] sm:$0xff] }
 0x4c7   :  { %v828_v25 = vpop.xlane.xlu1 %827  ;;  %1155 = vmatpush.bf16.msrb.mxu1 %v1531_v12  ;;  %1142 = vmatpush.bf16.msrb.mxu0 %v1522_v16 }
 0x4c8   :  { %v837_v13 = vmul.f32 %v1995_v9, %v828_v25 }
 0x4ca   :  { %v2003_v14 = vsub.f32 %v824_v27, %v837_v13 }
 0x4cb   :  { %1156 = vmatpush.bf16.msrb.mxu1 %v1530_v17  ;;  %1143 = vmatpush.bf16.msrb.mxu0 %v1521_v20 }
 0x4cc   :  { %v841_v15 = vmul.f32 %v2003_v14, %v2003_v14 }
 0x4ce   :  { %844 = vadd.xlane.f32.xlu0 %v841_v15 }
 0x4cf   :  { %1157 = vmatpush.bf16.msrb.mxu1 %v1529_v21  ;;  %1144 = vmatpush.bf16.msrb.mxu0 %v1520_v4  ;;  %v1210_v4 = vperm.slane %v2109_v35, 6 }
 0x4d3   :  { %1158 = vmatpush.bf16.msrb.mxu1 %v1528_v26  ;;  %1145 = vmatpush.bf16.msrb.mxu0 %v1519_v45 }
 0x4d7   :  { %1159 = vmatpush.bf16.msrb.mxu1 %v1527_v46  ;;  %1146 = vmatpush.bf16.msrb.mxu0 %v1518_v49 }
 0x4db   :  { %1160 = vmatpush.bf16.msrb.mxu1 %v1526_v50 }
 0x4df   :  { %1161 = vmatpush.bf16.msrb.mxu1 %v1525_v48 }
 0x539   :  { %v843_v63 = vpop.xlane.xlu2 %842 }
 0x53a   :  { %v846_v27 = vmul.f32 %v843_v63, %v1995_v9 }
 0x53c   :  { %v848_v59 = vadd.f32 1e-05, %v846_v27 }
 0x53e   :  { %1611 = vrsqrt.f32 %v848_v59  ;;  %vm856_vm6 = vweird.f32 %v848_v59 }
 0x541   :  { %v845_v8 = vpop.xlane.xlu0 %844 }
 0x542   :  { %v847_v24 = vmul.f32 %v845_v8, %v1995_v9 }
 0x544   :  { %v1612_v25 = vpop.eup %1611  ;;  %v849_v13 = vadd.f32 1e-05, %v847_v24 }
 0x545   :  { %v851_v15 = vmul.f32 %v1612_v25, %v848_v59  ;;  %vm857_vm5 = vweird.f32 %v1612_v25 }
 0x546   :  { %1613 = vrsqrt.f32 %v849_v13  ;;  %vm858_vm7 = vmor %vm856_vm6, %vm857_vm5  ;;  %vm866_vm9 = vweird.f32 %v849_v13 }
 0x547   :  { %v852_v18 = vmul.f32 %v1612_v25, %v851_v15  ;;  %v1680_v15 = vmov 0  }
 0x548   :  { %1575 = vset.pattern.permute.xlu1 %v1680_v15  ;;  %1576 = vset.pattern.permute.xlu0 %v1680_v15 }
 0x549   :  { %v853_v19 = vmul.f32 0.5, %v852_v18 }
 0x54b   :  { %v854_v22 = vsub.f32 1.5, %v853_v19 }
 0x54c   :  { %v1614_v23 = vpop.eup %1613 }
 0x54d   :  { %v855_v28 = vmul.f32 %v1612_v25, %v854_v22  ;;  %v861_v29 = vmul.f32 %v1614_v23, %v849_v13  ;;  %vm867_vm8 = vweird.f32 %v1614_v23  ;;  %v1216_v13 = vld [vmem:[%s2134_s2] sm:$0xff] }
 0x54e   :  { %vm868_vm10 = vmor %vm866_vm9, %vm867_vm8  ;;  %vm1218_vm11 = vcmp.gt.f32.partialorder %v1216_v13, 0.0 }
 0x54f   :  { %v862_v30 = vmul.f32 %v1614_v23, %v861_v29  ;;  %v859_v31 = vsel %vm858_vm7, %v1612_v25, %v855_v28  ;;  %v1220_v16 = vsel %vm1218_vm11, 1, %v1680_v15  ;;  %v1217_v29 = vld [vmem:[%s2134_s2 + $0x8] sm:$0xff]  ;;  %s1681_s2 = smov [#allocation5]  }
 0x550   :  { %v870_v34 = vmul.f32 %v859_v31, %v1998_v11  ;;  %1223 = vperm.xlu1 %1575, %v1220_v16   ;;  %vm1219_vm12 = vcmp.gt.f32.partialorder %v1217_v29, 0.0  ;;  %s1238_s16 = sshll.u32 %s1681_s2, 4  ;;  %s1239_s16 = int_to_ptr.vmem [resolvable:$true] %s1238_s16 }
 0x551   :  { %v863_v32 = vmul.f32 0.5, %v862_v30  ;;  %v1221_v30 = vsel %vm1219_vm12, 1, %v1680_v15 }
 0x552   :  { %v873_v40 = vmul.f32 %v872_v36, %v870_v34 }
 0x553   :  { %v864_v33 = vsub.f32 1.5, %v863_v32 }
 0x554   :  { %v876_v43 = vadd.f32 %v875_v41, %v873_v40 }
 0x555   :  { %v865_v37 = vmul.f32 %v1614_v23, %v864_v33 }
 0x557   :  { %v869_v38 = vsel %vm868_vm10, %v1614_v23, %v865_v37 }
 0x558   :  { %v871_v39 = vmul.f32 %v869_v38, %v2003_v14  ;;  %v1517_v14 = vld [vmem:[#allocation2] sm:$0xff] }
 0x559   :  { %1147 = vmatpush.bf16.msrb.mxu0 %v1517_v14 }
 0x55a   :  { %v874_v42 = vmul.f32 %v872_v36, %v871_v39 }
 0x55c   :  { %v877_v44 = vadd.f32 %v875_v41, %v874_v42 }
 0x55e   :  { %v878_v11 = vpack.c.bf16 %v877_v44, %v876_v43 }
 0x560   :  { %985 = vmatmul.bf16.vlgmr.msra.gmra.mxu2 %v878_v11  ;;  %999 = vmatmul.bf16.vlgmr.msra.gmra.mxu3 %v878_v11 }
 0x5c2   :  { %v1224_v49 = vpop.permute.xlu1 %1223 }
 0x5c3   :  { %vm1228_vm1 = vcmp.eq.s32.totalorder %v1224_v49, 1 }
 0x5e3   :  { %v986_v51 = vpop.f32.mrf.mxu2  ;;  %v1000_v52 = vpop.f32.mrf.mxu3 }
 0x5e4   :  { %v987_v55 = vadd.f32 %v986_v51, %v895_v54  ;;  %v1001_v56 = vadd.f32 %v1000_v52, %v896_v47 }
 0x5e6   :  { %v1005_v62 = vmax.f32 %v987_v55, 0.0  ;;  %v1006_v63 = vmax.f32 %v1001_v56, 0.0 }
 0x5eb   :  { %v988_v57 = vpop.f32.mrf.mxu2  ;;  %v1002_v58 = vpop.f32.mrf.mxu3 }
 0x5ec   :  { %v989_v61 = vadd.f32 %v988_v57, %v895_v54  ;;  %v1003_v53 = vadd.f32 %v1002_v58, %v896_v47 }
 0x5ee   :  { %v1007_v0 = vmax.f32 %v989_v61, 0.0  ;;  %v1008_v1 = vmax.f32 %v1003_v53, 0.0 }
 0x5f0   :  { %v1009_v2 = vpack.c.bf16 %v1007_v0, %v1005_v62  ;;  %v1010_v27 = vpack.c.bf16 %v1008_v1, %v1006_v63 }
 0x5f2   :  { %1148 = vmatmul.bf16.vlgmr.msrb.gmra.mxu0 %v1009_v2  ;;  %1162 = vmatmul.bf16.vlgmr.msrb.gmra.mxu1 %v1010_v27 }
 0x66f   :  { %v1149_v5 = vpop.f32.mrf.mxu0  ;;  %v1163_v59 = vpop.f32.mrf.mxu1 }
 0x670   :  { %v1150_v6 = vadd.f32 %v1149_v5, %v1043_v3 }
 0x672   :  { %v1164_v60 = vadd.f32 %v1163_v59, %v1150_v6 }
 0x674   :  { %v1168_v7 = vadd.f32 %v1164_v60, %v876_v43 }
 0x676   :  { %1170 = vadd.xlane.f32.xlu0 %v1168_v7 }
 0x677   :  { %v1151_v8 = vpop.f32.mrf.mxu0  ;;  %v1165_v10 = vpop.f32.mrf.mxu1 }
 0x678   :  { %v1152_v24 = vadd.f32 %v1151_v8, %v1043_v3 }
 0x67a   :  { %v1166_v12 = vadd.f32 %v1165_v10, %v1152_v24 }
 0x67c   :  { %v1169_v25 = vadd.f32 %v1166_v12, %v877_v44 }
 0x67e   :  { %1172 = vadd.xlane.f32.xlu0 %v1169_v25 }
 0x6e9   :  { %v1171_v17 = vpop.xlane.xlu0 %1170 }
 0x6ea   :  { %v1174_v18 = vmul.f32 %v1171_v17, %v1995_v9 }
 0x6ec   :  { %v1176_v19 = vsub.f32 %v1168_v7, %v1174_v18 }
 0x6ee   :  { %v1178_v20 = vmul.f32 %v1176_v19, %v1176_v19 }
 0x6f0   :  { %1180 = vadd.xlane.f32.xlu0 %v1178_v20 }
 0x6f1   :  { %v1173_v21 = vpop.xlane.xlu0 %1172 }
 0x6f2   :  { %v1175_v22 = vmul.f32 %v1173_v21, %v1995_v9 }
 0x6f4   :  { %v1177_v23 = vsub.f32 %v1169_v25, %v1175_v22 }
 0x6f6   :  { %v1179_v28 = vmul.f32 %v1177_v23, %v1177_v23 }
 0x6f8   :  { %1182 = vadd.xlane.f32.xlu0 %v1179_v28 }
 0x70c   :  { %1226 = vperm.xlu0 %1576, %v1221_v30  }
 0x763   :  { %v1181_v31 = vpop.xlane.xlu0 %1180 }
 0x764   :  { %v1184_v32 = vmul.f32 %v1181_v31, %v1995_v9 }
 0x766   :  { %v1186_v33 = vadd.f32 1e-05, %v1184_v32 }
 0x768   :  { %1615 = vrsqrt.f32 %v1186_v33  ;;  %vm1194_vm14 = vweird.f32 %v1186_v33 }
 0x76b   :  { %v1183_v34 = vpop.xlane.xlu0 %1182 }
 0x76c   :  { %v1185_v36 = vmul.f32 %v1183_v34, %v1995_v9  ;;  %v1213_v9 = vperm.slane %v2109_v35, 7 }
 0x76e   :  { %v1616_v37 = vpop.eup %1615  ;;  %v1187_v38 = vadd.f32 1e-05, %v1185_v36 }
 0x76f   :  { %v1189_v39 = vmul.f32 %v1616_v37, %v1186_v33  ;;  %vm1195_vm13 = vweird.f32 %v1616_v37 }
 0x770   :  { %1617 = vrsqrt.f32 %v1187_v38  ;;  %vm1196_vm15 = vmor %vm1194_vm14, %vm1195_vm13  ;;  %vm1204_vm2 = vweird.f32 %v1187_v38 }
 0x771   :  { %v1190_v40 = vmul.f32 %v1616_v37, %v1189_v39 }
 0x773   :  { %v1191_v41 = vmul.f32 0.5, %v1190_v40 }
 0x775   :  { %v1192_v42 = vsub.f32 1.5, %v1191_v41 }
 0x776   :  { %v1618_v43 = vpop.eup %1617 }
 0x777   :  { %v1193_v44 = vmul.f32 %v1616_v37, %v1192_v42  ;;  %v1199_v11 = vmul.f32 %v1618_v43, %v1187_v38  ;;  %vm1205_vm0 = vweird.f32 %v1618_v43 }
 0x778   :  { %vm1206_vm3 = vmor %vm1204_vm2, %vm1205_vm0 }
 0x779   :  { %v1200_v26 = vmul.f32 %v1618_v43, %v1199_v11  ;;  %v1197_v45 = vsel %vm1196_vm15, %v1616_v37, %v1193_v44 }
 0x77a   :  { %v1208_v46 = vmul.f32 %v1197_v45, %v1176_v19 }
 0x77b   :  { %v1201_v50 = vmul.f32 0.5, %v1200_v26 }
 0x77c   :  { %v1211_v14 = vmul.f32 %v1210_v4, %v1208_v46 }
 0x77d   :  { %v1202_v48 = vsub.f32 1.5, %v1201_v50 }
 0x77e   :  { %v1214_v51 = vadd.f32 %v1213_v9, %v1211_v14  ;;  %v1227_v56 = vpop.permute.xlu0 %1226 }
 0x77f   :  { %v1203_v52 = vmul.f32 %v1618_v43, %v1202_v48  ;;  %vm1229_vm4 = vcmp.eq.s32.totalorder %v1227_v56, 1 }
 0x780   :  { %v1230_v54 = vsel %vm1228_vm1, 0.0, %v1214_v51 }
 0x781   :  { %1232 = vst [vmem:[#allocation5] sm:$0xff] %v1230_v54  ;;  %v1207_v47 = vsel %vm1206_vm3, %v1618_v43, %v1203_v52 }
 0x782   :  { %v1209_v55 = vmul.f32 %v1207_v47, %v1177_v23 }
 0x784   :  { %v1212_v35 = vmul.f32 %v1210_v4, %v1209_v55 }
 0x786   :  { %v1215_v57 = vadd.f32 %v1213_v9, %v1212_v35 }
 0x788   :  { %v1231_v58 = vsel %vm1229_vm4, 0.0, %v1215_v57 }
 0x789   :  { %1233 = vst [vmem:[#allocation5 + $0x8] sm:$0xff] %v1231_v58 }
 0x78a   :  { %1246 = dma.vmem_to_hbm [thread:$0]  %s1239_s16, 256, %s1241_s1, [#allocation4], %s1682_s3, %s1682_s3, %s1683_s0  }
 0x78b   :  { %1670 = dma.done.wait [#allocation4], 256  }
 0x78c   :  { %1671 = vsyncadd [#allocation4], 4294967040 }
 0x78d   :  { %1251 = vsyncpa [#allocation3], 1 }
 0x78e   :  { %1252 = vsyncpa [#allocation4], 1 }

</bundles_post_ra>
